<compile_context>
chip_gen: v7x
topology: tpu7x:2x2x1
jax: 0.10.0
libtpu: 0.0.40
codegen_flags: <defaults>
</compile_context>

<pallas_src>
import jax
import jax.numpy as jnp
from jax.experimental import pallas as pl
from jax.experimental.pallas import tpu as pltpu


_SQRT_HALF = 0.7071067811865476
_MIN_SPLIT_ROWS = 128  # only split the M grid in two if each half has >=128 rows


def _round_up(v, m):
    return (v + m - 1) // m * m


def _erf_poly(z):
    """erf via Abramowitz & Stegun 7.1.26 (|err| < 1.5e-7).

    mul/add/select on the VPU; exp and the (approximate) reciprocal go to the
    EUP slot, so the VALU slot stays light.
    """
    a1, a2, a3, a4, a5 = (0.254829592, -0.284496736, 1.421413741,
                          -1.453152027, 1.061405429)
    p = 0.3275911
    s = jnp.where(z >= 0.0, 1.0, -1.0)
    x = jnp.abs(z)
    t = pl.reciprocal(1.0 + p * x, approx=True)     # EUP vrcp, ~1e-4 rel err
    poly = ((((a5 * t + a4) * t + a3) * t + a2) * t + a1) * t
    return s * (1.0 - poly * jnp.exp(-x * x))


def _gelu_exact(x):
    # nn.GELU() default: 0.5 * x * (1 + erf(x / sqrt(2)))
    return 0.5 * x * (1.0 + _erf_poly(x * _SQRT_HALF))


def _mlp_kernel(x_ref, w1_ref, b1_ref, w2_ref, b2_ref, o_ref):
    # x_ref : (TM, Dp) bf16 tile of tokens (pipelined over the M grid axis)
    # w1_ref: (Dp, Hp) bf16 resident; b1_ref: (1, Hp) f32
    # w2_ref: (Hp, Dp) bf16 resident; b2_ref: (1, Dp) f32
    h = jnp.dot(x_ref[...], w1_ref[...], preferred_element_type=jnp.float32)
    h = _gelu_exact(h + b1_ref[...])
    # dropout: eval-mode identity (see TODO at top of file)
    out = jnp.dot(h.astype(w2_ref.dtype), w2_ref[...],
                  preferred_element_type=jnp.float32)
    o_ref[...] = (out + b2_ref[...]).astype(o_ref.dtype)


def prepare_mlp_params(w1, b1, w2, b2, *, compute_dtype=jnp.bfloat16):
    """One-time parameter preprocessing (hoist out of the per-step hot path).

    w1: (H, D)  nn.Linear(D, H).weight   (PyTorch (out, in) layout)
    b1: (H,)
    w2: (D, H)  nn.Linear(H, D).weight
    b2: (D,)
    Returns a dict of pre-transposed / padded / casted kernel-ready params.
    """
    H, D = w1.shape
    assert w2.shape == (D, H), w2.shape
    Dp = _round_up(D, 128)
    Hp = _round_up(H, 128)
    w1k = jnp.pad(w1.T, ((0, Dp - D), (0, Hp - H))).astype(compute_dtype)
    b1k = jnp.pad(b1, (0, Hp - H)).astype(jnp.float32).reshape(1, Hp)
    w2k = jnp.pad(w2.T, ((0, Hp - H), (0, Dp - D))).astype(compute_dtype)
    b2k = jnp.pad(b2, (0, Dp - D)).astype(jnp.float32).reshape(1, Dp)
    return dict(w1=w1k, b1=b1k, w2=w2k, b2=b2k,
                d=D, h=H, dp=Dp, hp=Hp, compute_dtype=compute_dtype)


def mlp_apply(params, x, *, dropout_ratio=0.0, training=False, block_m=512):
    """Fused MLP forward using pre-laid-out params from prepare_mlp_params."""
    if training and dropout_ratio > 0.0:
        # TODO(synk): implement training-mode dropout with pltpu.prng_random_bits.
        raise NotImplementedError("training-mode dropout is not implemented")

    D, H = params["d"], params["h"]
    Dp, Hp = params["dp"], params["hp"]
    cdt = params["compute_dtype"]
    cdt_bytes = jnp.dtype(cdt).itemsize
    out_bytes = jnp.dtype(x.dtype).itemsize

    orig_shape = x.shape
    assert orig_shape[-1] == D, (orig_shape, D)
    x2 = x.reshape(-1, D)
    M = x2.shape[0]

    # Rows aligned to the native sublane packing of the compute dtype
    # (8 for f32, 16 for bf16, 32 for int8).
    row_align = 8 * max(1, 4 // cdt_bytes)
    Mp = _round_up(M, row_align)

    # M-tile selection: cap at block_m; for moderate M split into >=2 grid
    # steps so both v7x TensorCores get work; tiny M stays single-step (a
    # second core would only duplicate the resident-weight DMA).
    if Mp > block_m:
        tm = _round_up(block_m, row_align)
    elif Mp >= 2 * _MIN_SPLIT_ROWS:
        tm = _round_up(pl.cdiv(Mp, 2), row_align)
    else:
        tm = Mp

    xk = x2
    if Mp != M or Dp != D:
        xk = jnp.pad(x2, ((0, Mp - M), (0, Dp - D)))
    xk = xk.astype(cdt)

    grid = (pl.cdiv(Mp, tm),)

    # Deterministic VMEM budget (worst case: everything double-buffered).
    vmem_need = (2 * tm * Dp * cdt_bytes            # x tiles
                 + 2 * tm * Dp * out_bytes          # out tiles
                 + 2 * (Dp * Hp + Hp * Dp) * cdt_bytes   # W1 + W2
                 + 2 * (Hp + Dp) * 4                # biases (f32)
                 + tm * Hp * 4)                     # f32 GELU intermediate
    vmem_limit = int(max(min(vmem_need + (4 << 20), 64 << 20), 16 << 20))

    cost = pl.CostEstimate(
        flops=4 * M * D * H,
        transcendentals=M * H,
        bytes_accessed=(Mp * Dp * cdt_bytes            # x in
                        + Mp * Dp * out_bytes          # out
                        + (Dp * Hp + Hp * Dp) * cdt_bytes
                        + (Hp + Dp) * 4),
    )

    out = pl.pallas_call(
        _mlp_kernel,
        out_shape=jax.ShapeDtypeStruct((Mp, Dp), x.dtype),
        grid_spec=pltpu.PrefetchScalarGridSpec(
            num_scalar_prefetch=0,
            grid=grid,
            in_specs=[
                pl.BlockSpec((tm, Dp), lambda i: (i, 0)),   # x tile (pipelined)
                pl.BlockSpec((Dp, Hp), lambda i: (0, 0)),   # W1 (resident)
                pl.BlockSpec((1, Hp), lambda i: (0, 0)),    # b1 (resident)
                pl.BlockSpec((Hp, Dp), lambda i: (0, 0)),   # W2 (resident)
                pl.BlockSpec((1, Dp), lambda i: (0, 0)),    # b2 (resident)
            ],
            out_specs=pl.BlockSpec((tm, Dp), lambda i: (i, 0)),
        ),
        compiler_params=pltpu.CompilerParams(
            dimension_semantics=("parallel",),
            vmem_limit_bytes=vmem_limit),
        cost_estimate=cost,
    )(xk, params["w1"], params["b1"], params["w2"], params["b2"])

    if Mp != M or Dp != D:
        out = out[:M, :D]
    return out.reshape(orig_shape)


def mlp(x, w1, b1, w2, b2, *, dropout_ratio=0.0, training=False,
        compute_dtype=jnp.bfloat16, block_m=512):
    """Convenience wrapper (prepares params per call — prefer prepare+apply)."""
    params = prepare_mlp_params(w1, b1, w2, b2, compute_dtype=compute_dtype)
    return mlp_apply(params, x, dropout_ratio=dropout_ratio,
                     training=training, block_m=block_m)


if __name__ == "__main__":
    # Small shapes consistent with the module: tokens (2, 8), in=32, hidden=128.
    B, S = 2, 8
    in_features = 32
    hidden_features = 128
    dropout_ratio = 0.1  # identity at inference

    key = jax.random.PRNGKey(0)
    kx, k1, k2, k3, k4 = jax.random.split(key, 5)
    x = jax.random.normal(kx, (B, S, in_features), dtype=jnp.float32)
    w1 = jax.random.normal(k1, (hidden_features, in_features), jnp.float32) * 0.05
    b1 = jax.random.normal(k2, (hidden_features,), jnp.float32) * 0.05
    w2 = jax.random.normal(k3, (in_features, hidden_features), jnp.float32) * 0.05
    b2 = jax.random.normal(k4, (in_features,), jnp.float32) * 0.05

    # One-time parameter prep (transpose / pad / bf16 cast), then apply.
    params = prepare_mlp_params(w1, b1, w2, b2)
    out = mlp_apply(params, x, dropout_ratio=dropout_ratio)
    out = jax.block_until_ready(out)

    # Pure-JAX f32 reference: linear1 -> exact (erf) GELU -> dropout(eval=id) -> linear2
    h_ref = x @ w1.T + b1
    h_ref = jax.nn.gelu(h_ref, approximate=False)
    ref = h_ref @ w2.T + b2

    assert out.shape == x.shape
    max_err = float(jnp.max(jnp.abs(out - ref)))
    # bf16 MXU operands => loosened tolerance vs the f32 reference.
    assert jnp.allclose(out, ref, atol=2e-2, rtol=2e-2), max_err
    print("KERNEL_OK")
</pallas_src>

<mosaic_0001>
module attributes {stable_mosaic.version = 11 : i64} {
  func.func @_mlp_kernel(%arg0: i32, %arg1: memref<16x128xbf16, #tpu.memory_space<vmem>>, %arg2: memref<128x128xbf16, #tpu.memory_space<vmem>>, %arg3: memref<1x128xf32, #tpu.memory_space<vmem>>, %arg4: memref<128x128xbf16, #tpu.memory_space<vmem>>, %arg5: memref<1x128xf32, #tpu.memory_space<vmem>>, %arg6: memref<16x128xf32, #tpu.memory_space<vmem>>) attributes {dimension_semantics = [#tpu.dimension_semantics<parallel>], iteration_bounds = array<i64: 1>, scalar_prefetch = 0 : i64, scratch_operands = 0 : i64, tpu.core_type = #tpu.core_type<tc>, window_params = [{transform_indices = @transform_0, window_bounds = array<i64: 16, 128>}, {pipeline_mode = #tpu.pipeline_mode<synchronous>, transform_indices = @transform_1, window_bounds = array<i64: 128, 128>}, {pipeline_mode = #tpu.pipeline_mode<synchronous>, transform_indices = @transform_2, window_bounds = array<i64: 1, 128>}, {pipeline_mode = #tpu.pipeline_mode<synchronous>, transform_indices = @transform_3, window_bounds = array<i64: 128, 128>}, {pipeline_mode = #tpu.pipeline_mode<synchronous>, transform_indices = @transform_4, window_bounds = array<i64: 1, 128>}, {transform_indices = @transform_5, window_bounds = array<i64: 16, 128>}]} {
    %c0 = arith.constant 0 : index
    %c0_0 = arith.constant 0 : index
    %0 = vector.load %arg1[%c0, %c0_0] : memref<16x128xbf16, #tpu.memory_space<vmem>>, vector<16x128xbf16>
    %c0_1 = arith.constant 0 : index
    %c0_2 = arith.constant 0 : index
    %1 = vector.load %arg2[%c0_1, %c0_2] : memref<128x128xbf16, #tpu.memory_space<vmem>>, vector<128x128xbf16>
    %cst = arith.constant dense<0.000000e+00> : vector<16x128xf32>
    %2 = tpu.matmul %0, %1, %cst {dimension_numbers = #tpu.dot_dimension_numbers<[1], [0], [0], [1], [0, 0, 1, 1], [], []>} : vector<16x128xbf16>, vector<128x128xbf16>, vector<16x128xf32> -> vector<16x128xf32>
    %c0_3 = arith.constant 0 : index
    %c0_4 = arith.constant 0 : index
    %3 = vector.load %arg3[%c0_3, %c0_4] : memref<1x128xf32, #tpu.memory_space<vmem>>, vector<1x128xf32>
    %4 = vector.broadcast %3 : vector<1x128xf32> to vector<16x128xf32>
    %5 = arith.addf %2, %4 : vector<16x128xf32>
    %cst_5 = arith.constant 5.000000e-01 : f32
    %6 = vector.broadcast %cst_5 : f32 to vector<16x128xf32>
    %7 = arith.mulf %6, %5 : vector<16x128xf32>
    %cst_6 = arith.constant 0.707106769 : f32
    %8 = vector.broadcast %cst_6 : f32 to vector<16x128xf32>
    %9 = arith.mulf %5, %8 : vector<16x128xf32>
    %cst_7 = arith.constant 0.000000e+00 : f32
    %10 = vector.broadcast %cst_7 : f32 to vector<16x128xf32>
    %11 = arith.cmpf oge, %9, %10 : vector<16x128xf32>
    %cst_8 = arith.constant 1.000000e+00 : f32
    %cst_9 = arith.constant -1.000000e+00 : f32
    %12 = vector.broadcast %cst_8 : f32 to vector<16x128xf32>
    %13 = vector.broadcast %cst_9 : f32 to vector<16x128xf32>
    %14 = arith.select %11, %12, %13 : vector<16x128xi1>, vector<16x128xf32>
    %15 = math.absf %9 : vector<16x128xf32>
    %cst_10 = arith.constant 0.327591091 : f32
    %16 = vector.broadcast %cst_10 : f32 to vector<16x128xf32>
    %17 = arith.mulf %16, %15 : vector<16x128xf32>
    %cst_11 = arith.constant 1.000000e+00 : f32
    %18 = vector.broadcast %cst_11 : f32 to vector<16x128xf32>
    %19 = arith.addf %18, %17 : vector<16x128xf32>
    %20 = tpu.reciprocal %19 {approx = true} : vector<16x128xf32> -> vector<16x128xf32>
    %cst_12 = arith.constant 1.06140542 : f32
    %21 = vector.broadcast %cst_12 : f32 to vector<16x128xf32>
    %22 = arith.mulf %21, %20 : vector<16x128xf32>
    %cst_13 = arith.constant -1.45315206 : f32
    %23 = vector.broadcast %cst_13 : f32 to vector<16x128xf32>
    %24 = arith.addf %22, %23 : vector<16x128xf32>
    %25 = arith.mulf %24, %20 : vector<16x128xf32>
    %cst_14 = arith.constant 1.42141378 : f32
    %26 = vector.broadcast %cst_14 : f32 to vector<16x128xf32>
    %27 = arith.addf %25, %26 : vector<16x128xf32>
    %28 = arith.mulf %27, %20 : vector<16x128xf32>
    %cst_15 = arith.constant -0.284496725 : f32
    %29 = vector.broadcast %cst_15 : f32 to vector<16x128xf32>
    %30 = arith.addf %28, %29 : vector<16x128xf32>
    %31 = arith.mulf %30, %20 : vector<16x128xf32>
    %cst_16 = arith.constant 0.254829586 : f32
    %32 = vector.broadcast %cst_16 : f32 to vector<16x128xf32>
    %33 = arith.addf %31, %32 : vector<16x128xf32>
    %34 = arith.mulf %33, %20 : vector<16x128xf32>
    %cst_17 = arith.constant 0.000000e+00 : f32
    %35 = vector.broadcast %cst_17 : f32 to vector<16x128xf32>
    %36 = arith.subf %35, %15 : vector<16x128xf32>
    %37 = arith.mulf %36, %15 : vector<16x128xf32>
    %38 = math.exp %37 : vector<16x128xf32>
    %39 = arith.mulf %34, %38 : vector<16x128xf32>
    %cst_18 = arith.constant 1.000000e+00 : f32
    %40 = vector.broadcast %cst_18 : f32 to vector<16x128xf32>
    %41 = arith.subf %40, %39 : vector<16x128xf32>
    %42 = arith.mulf %14, %41 : vector<16x128xf32>
    %cst_19 = arith.constant 1.000000e+00 : f32
    %43 = vector.broadcast %cst_19 : f32 to vector<16x128xf32>
    %44 = arith.addf %43, %42 : vector<16x128xf32>
    %45 = arith.mulf %7, %44 : vector<16x128xf32>
    %46 = arith.truncf %45 : vector<16x128xf32> to vector<16x128xbf16>
    %c0_20 = arith.constant 0 : index
    %c0_21 = arith.constant 0 : index
    %47 = vector.load %arg4[%c0_20, %c0_21] : memref<128x128xbf16, #tpu.memory_space<vmem>>, vector<128x128xbf16>
    %cst_22 = arith.constant dense<0.000000e+00> : vector<16x128xf32>
    %48 = tpu.matmul %46, %47, %cst_22 {dimension_numbers = #tpu.dot_dimension_numbers<[1], [0], [0], [1], [0, 0, 1, 1], [], []>} : vector<16x128xbf16>, vector<128x128xbf16>, vector<16x128xf32> -> vector<16x128xf32>
    %c0_23 = arith.constant 0 : index
    %c0_24 = arith.constant 0 : index
    %49 = vector.load %arg5[%c0_23, %c0_24] : memref<1x128xf32, #tpu.memory_space<vmem>>, vector<1x128xf32>
    %50 = vector.broadcast %49 : vector<1x128xf32> to vector<16x128xf32>
    %51 = arith.addf %48, %50 : vector<16x128xf32>
    %c0_25 = arith.constant 0 : index
    %c0_26 = arith.constant 0 : index
    %52 = vector.load %arg6[%c0_25, %c0_26] : memref<16x128xf32, #tpu.memory_space<vmem>>, vector<16x128xf32>
    tpu.vector_store %arg6[%c0_25, %c0_26], %51 {strides = array<i32>} : memref<16x128xf32, #tpu.memory_space<vmem>>, vector<16x128xf32>,
    return
  }
  func.func @transform_0(%arg0: i32) -> (i32, i32) {
    %c0_i32 = arith.constant 0 : i32
    %c0_i32_0 = arith.constant 0 : i32
    return %arg0, %c0_i32 : i32, i32
  }
  func.func @transform_1(%arg0: i32) -> (i32, i32) {
    %c0_i32 = arith.constant 0 : i32
    %c0_i32_0 = arith.constant 0 : i32
    %c0_i32_1 = arith.constant 0 : i32
    return %c0_i32, %c0_i32_0 : i32, i32
  }
  func.func @transform_2(%arg0: i32) -> (i32, i32) {
    %c0_i32 = arith.constant 0 : i32
    %c0_i32_0 = arith.constant 0 : i32
    %c0_i32_1 = arith.constant 0 : i32
    return %c0_i32, %c0_i32_0 : i32, i32
  }
  func.func @transform_3(%arg0: i32) -> (i32, i32) {
    %c0_i32 = arith.constant 0 : i32
    %c0_i32_0 = arith.constant 0 : i32
    %c0_i32_1 = arith.constant 0 : i32
    return %c0_i32, %c0_i32_0 : i32, i32
  }
  func.func @transform_4(%arg0: i32) -> (i32, i32) {
    %c0_i32 = arith.constant 0 : i32
    %c0_i32_0 = arith.constant 0 : i32
    %c0_i32_1 = arith.constant 0 : i32
    return %c0_i32, %c0_i32_0 : i32, i32
  }
  func.func @transform_5(%arg0: i32) -> (i32, i32) {
    %c0_i32 = arith.constant 0 : i32
    %c0_i32_0 = arith.constant 0 : i32
    return %arg0, %c0_i32 : i32, i32
  }
}

</mosaic_0001>

<bundles_post_ra>
// kernel: tpu_custom_call.1
= control target key start
LH: loop header
LB: loop body
LE: loop exit
PB: predicated region body
PF: predicated region fallthrough
CT: control target
= control target key end

     0   :  { %10 = vsyncpa [#allocation3], 0  ;;  %s686_s0 = inlined_call_operand.hbm [shape: bf16[16,128], index: 0, kind: input, shape index: {}]   ;;  %s687_s1 = inlined_call_operand.hbm [shape: bf16[128,128], index: 1, kind: input, shape index: {}]   ;;  %s688_s2 = inlined_call_operand.vmem [shape: f32[1,128], index: 2, kind: input, shape index: {}]   ;;  %s689_s3 = inlined_call_operand.hbm [shape: bf16[128,128], index: 3, kind: input, shape index: {}]   ;;  %s690_s4 = inlined_call_operand.vmem [shape: f32[1,128], index: 4, kind: input, shape index: {}]   ;;  %s691_s5 = inlined_call_operand.hbm [shape: f32[16,128], index: 5, kind: output, shape index: {}]  }
   0x1   :  { %11 = vsyncpa [#allocation6], 0 }
   0x2   :  { %12 = vsyncpa [#allocation4], 0  ;;  %s575_s18 = smov [#allocation5]   ;;  %s576_s20 = smov [#allocation2]  }
   0x3   :  { %s30_s19 = sshll.u32 %s575_s18, 4  ;;  %s18_s21 = sshll.u32 %s576_s20, 4  ;;  %s31_s19 = int_to_ptr.vmem [resolvable:$true] %s30_s19  ;;  %s616_s21 = int_to_ptr.vmem [resolvable:$true] %s18_s21 }
   0x4   :  { %s481_s24 = scalar_lea.hbm %s687_s1, 1024 }
   0x5   :  { %p482_p0 = scmp.ne.s32.totalorder %s687_s1, %s481_s24  ;;  %p485_p1 = scmp.lt.u32.totalorder %s481_s24, %s687_s1 }
   0x7   :  { %p487_p2 = pnand %p485_p1, %p482_p0 }
   0x9   :  { %490 = shalt.err (!%p487_p2)
}
   0xa   :  { %s491_s29 = scalar_lea.vmem %s31_s19, 1024  ;;  %p496_p4 = scmp.lt.s32.totalorder %s31_s19, %s31_s19 }
   0xb   :  { %p492_p3 = scmp.ne.s32.totalorder %s31_s19, %s491_s29  ;;  %p497_p5 = scmp.lt.s32.totalorder %s491_s29, %s491_s29 }
   0xd   :  { %p498_p6 = por %p497_p5, %p496_p4 }
   0xf   :  { %p499_p7 = pnand %p498_p6, %p492_p3 }
  0x11   :  { %502 = shalt.err (!%p499_p7)
}
  0x12   :  { %s577_s30 = smov 64   ;;  %s578_s6 = smov 4  }
  0x13   :  { %36 = dma.hbm_to_vmem [thread:$0]  %s687_s1, 1024, %s31_s19, [#allocation6], %s577_s30, %s577_s30, %s578_s6  }
  0x14   :  { %s503_s11 = scalar_lea.hbm %s686_s0, 128 }
  0x15   :  { %p504_p8 = scmp.ne.s32.totalorder %s686_s0, %s503_s11  ;;  %p507_p9 = scmp.lt.u32.totalorder %s503_s11, %s686_s0 }
  0x17   :  { %p509_p10 = pnand %p507_p9, %p504_p8 }
  0x19   :  { %512 = shalt.err (!%p509_p10)
}
  0x1a   :  { %s513_s16 = scalar_lea.vmem %s616_s21, 128  ;;  %p518_p12 = scmp.lt.s32.totalorder %s616_s21, %s616_s21 }
  0x1b   :  { %p514_p11 = scmp.ne.s32.totalorder %s616_s21, %s513_s16  ;;  %p519_p13 = scmp.lt.s32.totalorder %s513_s16, %s513_s16 }
  0x1d   :  { %p520_p0 = por %p519_p13, %p518_p12 }
  0x1f   :  { %p521_p1 = pnand %p520_p0, %p514_p11 }
  0x21   :  { %524 = shalt.err (!%p521_p1)
}
  0x22   :  { %24 = dma.hbm_to_vmem [thread:$0]  %s686_s0, 128, %s616_s21, [#allocation3], %s577_s30, %s577_s30, %s578_s6  }
  0x23   :  { %s579_s18 = smov [#allocation7]   ;;  %s525_s23 = scalar_lea.hbm %s689_s3, 1024 }
  0x24   :  { %s44_s19 = sshll.u32 %s579_s18, 4  ;;  %p526_p2 = scmp.ne.s32.totalorder %s689_s3, %s525_s23  ;;  %s45_s19 = int_to_ptr.vmem [resolvable:$true] %s44_s19 }
  0x25   :  { %p529_p3 = scmp.lt.u32.totalorder %s525_s23, %s689_s3 }
  0x27   :  { %p531_p4 = pnand %p529_p3, %p526_p2 }
  0x29   :  { %534 = shalt.err (!%p531_p4)
}
  0x2a   :  { %s535_s28 = scalar_lea.vmem %s45_s19, 1024  ;;  %p540_p6 = scmp.lt.s32.totalorder %s45_s19, %s45_s19 }
  0x2b   :  { %p536_p5 = scmp.ne.s32.totalorder %s45_s19, %s535_s28  ;;  %p541_p7 = scmp.lt.s32.totalorder %s535_s28, %s535_s28 }
  0x2d   :  { %p542_p8 = por %p541_p7, %p540_p6 }
  0x2f   :  { %p543_p9 = pnand %p542_p8, %p536_p5 }
  0x31   :  { %546 = shalt.err (!%p543_p9)
}
  0x32   :  { %50 = dma.hbm_to_vmem [thread:$0]  %s689_s3, 1024, %s45_s19, [#allocation6], %s577_s30, %s577_s30, %s578_s6  }
  0x33   :  { %569 = dma.done.wait [#allocation3], 128  }
  0x34   :  { %570 = vsyncadd [#allocation3], 4294967168 }
  0x35   :  { %571 = dma.done.wait [#allocation6], 2048  }
  0x36   :  { %572 = vsyncadd [#allocation6], 4294965248  ;;  %v580_v0 = vmov 0.0   ;;  %vm581_vm0 = vmmov 0   ;;  %v456_v1 = vld [vmem:[#allocation5] sm:$0xff]   ;;  %v457_v2 = vld [vmem:[#allocation5 + $0x8] sm:$0xff]  }
  0x37   :  { %405 = vmatprep.subr.bf16.mxu0 %v580_v0  ;;  %421 = vmatprep.mubr.msk.bf16.mxu0 %vm581_vm0, %v580_v0  ;;  %v458_v3 = vld [vmem:[#allocation5 + $0x10] sm:$0xff]   ;;  %v459_v4 = vld [vmem:[#allocation5 + $0x18] sm:$0xff]   ;;  %v460_v5 = vld [vmem:[#allocation5 + $0x20] sm:$0xff]   ;;  %v582_v63 = vmov -1.0   ;;  %s583_s6 = smov [#allocation8]  }
  0x38   :  { %425 = vmatprep.subr.bf16.mxu1 %v580_v0  ;;  %441 = vmatprep.mubr.msk.bf16.mxu1 %vm581_vm0, %v580_v0  ;;  %v461_v6 = vld [vmem:[#allocation5 + $0x28] sm:$0xff]   ;;  %v462_v7 = vld [vmem:[#allocation5 + $0x30] sm:$0xff]   ;;  %v463_v8 = vld [vmem:[#allocation5 + $0x38] sm:$0xff]   ;;  %s355_s7 = sshll.u32 %s583_s6, 4  ;;  %s356_s7 = int_to_ptr.vmem [resolvable:$true] %s355_s7 }
  0x39   :  { %406 = vmatpush3.bf16.msra.mxu0 %v456_v1  ;;  %v464_v9 = vld [vmem:[#allocation2] sm:$0xff]   ;;  %v465_v10 = vld [vmem:[#allocation7] sm:$0xff]   ;;  %v466_v11 = vld [vmem:[#allocation7 + $0x8] sm:$0xff]   ;;  %s547_s8 = scalar_lea.vmem %s356_s7, 256  ;;  %p552_p11 = scmp.lt.s32.totalorder %s356_s7, %s356_s7 }
  0x3a   :  { %407 = vmatprep.subr.bf16.mxu0 %v580_v0  ;;  %426 = vmatpush3.bf16.msra.mxu1 %v465_v10  ;;  %v467_v12 = vld [vmem:[#allocation7 + $0x10] sm:$0xff]   ;;  %v468_v13 = vld [vmem:[#allocation7 + $0x18] sm:$0xff]   ;;  %v469_v14 = vld [vmem:[#allocation7 + $0x20] sm:$0xff]   ;;  %p548_p10 = scmp.ne.s32.totalorder %s356_s7, %s547_s8  ;;  %p553_p12 = scmp.lt.s32.totalorder %s547_s8, %s547_s8 }
  0x3b   :  { %427 = vmatprep.subr.bf16.mxu1 %v580_v0  ;;  %v470_v15 = vld [vmem:[#allocation7 + $0x28] sm:$0xff]   ;;  %v471_v16 = vld [vmem:[#allocation7 + $0x30] sm:$0xff]   ;;  %v472_v17 = vld [vmem:[#allocation7 + $0x38] sm:$0xff]  }
  0x3c   :  { %v368_v18 = vld [vmem:[%s688_s2] ss:$0 sm:$0xff]  ;;  %p554_p13 = por %p553_p12, %p552_p11 }
  0x3d   :  { %408 = vmatpush3.bf16.msra.mxu0 %v457_v2 }
  0x3e   :  { %409 = vmatprep.subr.bf16.mxu0 %v580_v0  ;;  %428 = vmatpush3.bf16.msra.mxu1 %v466_v11  ;;  %p555_p0 = pnand %p554_p13, %p548_p10 }
  0x3f   :  { %429 = vmatprep.subr.bf16.mxu1 %v580_v0 }
  0x41   :  { %410 = vmatpush3.bf16.msra.mxu0 %v458_v3 }
  0x42   :  { %411 = vmatprep.subr.bf16.mxu0 %v580_v0  ;;  %430 = vmatpush3.bf16.msra.mxu1 %v467_v12 }
  0x43   :  { %431 = vmatprep.subr.bf16.mxu1 %v580_v0 }
  0x45   :  { %412 = vmatpush3.bf16.msra.mxu0 %v459_v4 }
  0x46   :  { %413 = vmatprep.subr.bf16.mxu0 %v580_v0  ;;  %432 = vmatpush3.bf16.msra.mxu1 %v468_v13  ;;  %v378_v13 = vld [vmem:[%s690_s4] ss:$0 sm:$0xff] }
  0x47   :  { %433 = vmatprep.subr.bf16.mxu1 %v580_v0 }
  0x49   :  { %414 = vmatpush3.bf16.msra.mxu0 %v460_v5 }
  0x4a   :  { %415 = vmatprep.subr.bf16.mxu0 %v580_v0  ;;  %434 = vmatpush3.bf16.msra.mxu1 %v469_v14 }
  0x4b   :  { %435 = vmatprep.subr.bf16.mxu1 %v580_v0 }
  0x4d   :  { %416 = vmatpush3.bf16.msra.mxu0 %v461_v6 }
  0x4e   :  { %417 = vmatprep.subr.bf16.mxu0 %v580_v0  ;;  %436 = vmatpush3.bf16.msra.mxu1 %v470_v15 }
  0x4f   :  { %437 = vmatprep.subr.bf16.mxu1 %v580_v0 }
  0x51   :  { %418 = vmatpush3.bf16.msra.mxu0 %v462_v7 }
  0x52   :  { %419 = vmatprep.subr.bf16.mxu0 %v580_v0  ;;  %438 = vmatpush3.bf16.msra.mxu1 %v471_v16 }
  0x53   :  { %439 = vmatprep.subr.bf16.mxu1 %v580_v0 }
  0x55   :  { %420 = vmatpush3.bf16.msra.mxu0 %v463_v8 }
  0x56   :  { %440 = vmatpush3.bf16.msra.mxu1 %v472_v17 }
  0x58   :  { %422 = vmatmul.mubr.bf16.vlgmr.msra.gmra.mrb[0].mxu0 %v464_v9 }
 0x12b   :  { %v176_v19 = vpop.f32.mrb[0].mxu0 }
 0x12c   :  { %v177_v20 = vadd.f32 %v368_v18, %v176_v19  ;;  %v423_v21 = vpop.f32.mrb[1].mxu0 }
 0x12d   :  { %v179_v22 = vpop.f32.mrb[2].mxu0 }
 0x12e   :  { %v185_v23 = vmul.f32 0.70710677, %v177_v20  ;;  %v180_v24 = vadd.f32 %v368_v18, %v179_v22  ;;  %v424_v25 = vpop.f32.mrb[3].mxu0  ;;  %v183_v7 = vmul.f32 0.5, %v177_v20 }
 0x130   :  { %v191_v26 = vand.u32 2147483647, %v185_v23  ;;  %v186_v27 = vmul.f32 0.70710677, %v180_v24  ;;  %vm187_vm1 = vcmp.ge.f32.partialorder %v185_v23, 0.0  ;;  %v184_v8 = vmul.f32 0.5, %v180_v24 }
 0x131   :  { %v189_v0 = vsel %vm187_vm1, 1.0, %v582_v63 }
 0x132   :  { %v193_v28 = vmul.f32 0.3275911, %v191_v26  ;;  %v192_v29 = vand.u32 2147483647, %v186_v27  ;;  %v217_v33 = vsub.f32 0.0, %v191_v26  ;;  %vm188_vm2 = vcmp.ge.f32.partialorder %v186_v27, 0.0 }
 0x133   :  { %v190_v4 = vsel %vm188_vm2, 1.0, %v582_v63 }
 0x134   :  { %v195_v30 = vadd.f32 1.0, %v193_v28  ;;  %v194_v31 = vmul.f32 0.3275911, %v192_v29  ;;  %v218_v34 = vsub.f32 0.0, %v192_v29  ;;  %v219_v36 = vmul.f32 %v217_v33, %v191_v26 }
 0x136   :  { %473 = vrcp.f32 %v195_v30  ;;  %v196_v32 = vadd.f32 1.0, %v194_v31  ;;  %v220_v40 = vmul.f32 %v218_v34, %v192_v29  ;;  %v221_v41 = vmul.f32 1.442695, %v219_v36 }
 0x138   :  { %475 = vrcp.f32 %v196_v32  ;;  %v223_v46 = vmul.f32 1.442695, %v220_v40 }
 0x139   :  { %477 = vpow2.f32 %v221_v41 }
 0x13a   :  { %479 = vpow2.f32 %v223_v46 }
 0x140   :  { %v474_v35 = vpop.eup %473 }
 0x141   :  { %v199_v37 = vmul.f32 1.0614054, %v474_v35 }
 0x142   :  { %v476_v38 = vpop.eup %475 }
 0x143   :  { %v201_v39 = vadd.f32 -1.4531521, %v199_v37  ;;  %v200_v42 = vmul.f32 1.0614054, %v476_v38  ;;  %v478_v57 = vpop.eup %477 }
 0x144   :  { %v480_v61 = vpop.eup %479 }
 0x145   :  { %v203_v43 = vmul.f32 %v474_v35, %v201_v39  ;;  %v202_v44 = vadd.f32 -1.4531521, %v200_v42 }
 0x147   :  { %v205_v45 = vadd.f32 1.4214138, %v203_v43  ;;  %v204_v47 = vmul.f32 %v476_v38, %v202_v44 }
 0x149   :  { %v207_v48 = vmul.f32 %v474_v35, %v205_v45  ;;  %v206_v49 = vadd.f32 1.4214138, %v204_v47 }
 0x14b   :  { %v209_v50 = vadd.f32 -0.28449672, %v207_v48  ;;  %v208_v51 = vmul.f32 %v476_v38, %v206_v49 }
 0x14d   :  { %v211_v52 = vmul.f32 %v474_v35, %v209_v50  ;;  %v210_v53 = vadd.f32 -0.28449672, %v208_v51 }
 0x14f   :  { %v213_v54 = vadd.f32 0.2548296, %v211_v52  ;;  %v212_v55 = vmul.f32 %v476_v38, %v210_v53 }
 0x151   :  { %v215_v56 = vmul.f32 %v474_v35, %v213_v54  ;;  %v214_v58 = vadd.f32 0.2548296, %v212_v55 }
 0x153   :  { %v225_v59 = vmul.f32 %v478_v57, %v215_v56  ;;  %v216_v60 = vmul.f32 %v476_v38, %v214_v58 }
 0x155   :  { %v227_v62 = vsub.f32 1.0, %v225_v59  ;;  %v226_v1 = vmul.f32 %v480_v61, %v216_v60 }
 0x157   :  { %v229_v2 = vmul.f32 %v227_v62, %v189_v0  ;;  %v228_v3 = vsub.f32 1.0, %v226_v1 }
 0x159   :  { %v231_v5 = vadd.f32 1.0, %v229_v2  ;;  %v230_v6 = vmul.f32 %v228_v3, %v190_v4 }
 0x15b   :  { %v232_v9 = vadd.f32 1.0, %v230_v6  ;;  %v233_v10 = vmul.f32 %v231_v5, %v183_v7 }
 0x15d   :  { %v234_v11 = vmul.f32 %v232_v9, %v184_v8 }
 0x15f   :  { %v235_v12 = vpack.c.bf16 %v234_v11, %v233_v10 }
 0x161   :  { %442 = vmatmul.mubr.bf16.vlgmr.msra.gmra.mrb[0].mxu1 %v235_v12 }
 0x234   :  { %v341_v14 = vpop.f32.mrb[0].mxu1 }
 0x235   :  { %v342_v15 = vadd.f32 %v378_v13, %v341_v14  ;;  %v443_v16 = vpop.f32.mrb[1].mxu1 }
 0x236   :  { %v344_v17 = vpop.f32.mrb[2].mxu1 }
 0x237   :  { %348 = vst [vmem:[#allocation8] sm:$0xff] %v342_v15  ;;  %v345_v18 = vadd.f32 %v378_v13, %v344_v17  ;;  %v444_v19 = vpop.f32.mrb[3].mxu1 }
 0x239   :  { %349 = vst [vmem:[#allocation8 + $0x8] sm:$0xff] %v345_v18 }
 0x23a   :  { %558 = shalt.err (!%p555_p0)
}
 0x23b   :  { %s559_s10 = scalar_lea.hbm %s691_s5, 256 }
 0x23c   :  { %p560_p1 = scmp.ne.s32.totalorder %s691_s5, %s559_s10  ;;  %p563_p2 = scmp.lt.u32.totalorder %s559_s10, %s691_s5 }
 0x23e   :  { %p565_p3 = pnand %p563_p2, %p560_p1 }
 0x240   :  { %568 = shalt.err (!%p565_p3)
}
 0x241   :  { %s584_s15 = smov 128   ;;  %s585_s16 = smov 8  }
 0x242   :  { %361 = dma.vmem_to_hbm [thread:$0]  %s356_s7, 256, %s691_s5, [#allocation4], %s584_s15, %s584_s15, %s585_s16  }
 0x243   :  { %573 = dma.done.wait [#allocation4], 256  }
 0x244   :  { %574 = vsyncadd [#allocation4], 4294967040 }
 0x245   :  { %365 = vsyncpa [#allocation3], 1 }
 0x246   :  { %366 = vsyncpa [#allocation6], 1 }
 0x247   :  { %367 = vsyncpa [#allocation4], 1 }

</bundles_post_ra>
